<compile_context>
chip_gen: v7x
topology: tpu7x:2x2x1
jax: 0.10.0
libtpu: 0.0.40
codegen_flags: <defaults>
</compile_context>

<pallas_src>
import jax
import jax.numpy as jnp
from jax.experimental import pallas as pl
from jax.experimental.pallas import tpu as pltpu


def _round_up(x, m):
    return ((x + m - 1) // m) * m


def _sublane(itemsize):
    # Native sublane granularity: 8 rows for 4-byte, 16 for 2-byte, 32 for 1-byte.
    return max(8, 32 // max(1, int(itemsize)))


def _vmem_capacity_bytes():
    try:
        cap = int(pltpu.get_tpu_info().vmem_capacity_bytes)
        if cap > 0:
            return cap
    except Exception:
        pass
    return 64 << 20  # conservative default (v7x per-TC figure)


def _pick_tile_rows(R, bytes_for_tr, budget_bytes, min_steps, align=8):
    """Largest divisor of R whose padded, double-buffered blocks fit `budget_bytes`,
    then shrunk (when possible) so the grid exposes >= min_steps steps for megacore
    without dropping per-step payload below ~256 KiB."""
    divs = [d for d in range(1, R + 1) if R % d == 0]
    aligned = [d for d in divs if d % align == 0 or d == R]
    pool = aligned if any(bytes_for_tr(d) <= budget_bytes for d in aligned) else divs
    fitting = [d for d in pool if bytes_for_tr(d) <= budget_bytes]
    tr = max(fitting) if fitting else min(pool)
    # TODO(synk): add a W-tiling fallback when even a single padded row exceeds the budget.
    floor_bytes = min(256 << 10, bytes_for_tr(R))
    while R // tr < min_steps:
        smaller = [d for d in pool if d < tr and bytes_for_tr(d) >= floor_bytes]
        if not smaller:
            break
        tr = max(smaller)
    return tr


def depth_to_space_nhwc_pallas(x_nhwc, block_size, *, tile_rows=None):
    """x_nhwc: (B, H, W, C). Returns (B, H*bs, W*bs, C // bs^2) NHWC."""
    B, H, W, C = x_nhwc.shape
    bs = block_size
    assert C % (bs * bs) == 0, "channels must be divisible by block_size**2"
    s_depth = C // (bs * bs)
    cs = bs * s_depth
    if bs == 1:
        return x_nhwc

    itemsize = jnp.dtype(x_nhwc.dtype).itemsize
    sub = _sublane(itemsize)
    R = B * H
    x_rows = x_nhwc.reshape(R, W, C)  # free view

    cap = _vmem_capacity_bytes()
    budget = cap // 4          # padded, double-buffered working-set budget
    vmem_limit = cap // 2      # scoped VMEM limit handed to Mosaic
    min_steps = 8              # keep both v7x TensorCores busy when feasible
    cost = pl.CostEstimate(flops=0, transcendentals=0,
                           bytes_accessed=2 * x_nhwc.size * itemsize)

    # Path A only when the strided input-DMA segments (cs*itemsize bytes) are wide
    # enough not to be descriptor-bound and cs is lane-aligned.
    use_dma_gather = (cs % 128 == 0) and (cs * itemsize >= 512)

    if use_dma_gather:
        in_row = _round_up(W, sub) * _round_up(cs, 128) * itemsize
        bytes_for_tr = lambda tr: 2 * tr * (2 * in_row)   # in + out, double-buffered
        if tile_rows is None:
            tile_rows = _pick_tile_rows(R, bytes_for_tr, budget,
                                        max(1, min_steps // bs), align=sub)
        TR = tile_rows
        assert R % TR == 0, "tile_rows must divide B*H"

        def copy_kernel(x_ref, o_ref):
            # Pure copy: the (w, i) transpose is done by the BlockSpec DMAs.
            o_ref[...] = x_ref[...]

        out = pl.pallas_call(
            copy_kernel,
            out_shape=jax.ShapeDtypeStruct((R, bs, W, cs), x_nhwc.dtype),
            grid=(R // TR, bs),
            in_specs=[pl.BlockSpec((TR, W, cs), lambda r, i: (r, 0, i))],
            out_specs=pl.BlockSpec((TR, None, W, cs), lambda r, i: (r, i, 0, 0)),
            compiler_params=pltpu.CompilerParams(
                dimension_semantics=("parallel", "parallel"),
                allow_input_fusion=[True],
                vmem_limit_bytes=vmem_limit,
            ),
            cost_estimate=cost,
        )(x_rows)
        return out.reshape(B, H * bs, W * bs, s_depth)   # free view

    # ---- Path B: contiguous input block, bs static lane-dense stores ----
    in_row = _round_up(W, sub) * _round_up(C, 128) * itemsize
    out_row = max(_round_up(W * C, 128),
                  _round_up(bs, sub) * _round_up(W * cs, 128)) * itemsize
    bytes_for_tr = lambda tr: 2 * tr * (in_row + out_row)
    if tile_rows is None:
        tile_rows = _pick_tile_rows(R, bytes_for_tr, budget, min_steps, align=sub)
    TR = tile_rows
    assert R % TR == 0, "tile_rows must divide B*H"

    lane_fold = (W * cs) % 128 == 0 and (TR % 8 == 0 or TR == R)

    if lane_fold:
        # Output (R, W*C): bs folded into the lane dim -> full-width aligned stores.
        def kernel(x_ref, o_ref):
            for i in range(bs):                                   # static unroll
                chunk = x_ref[:, :, pl.ds(i * cs, cs)]            # (TR, W, cs)
                o_ref[:, pl.ds(i * W * cs, W * cs)] = chunk.reshape(TR, W * cs)

        out_shape = jax.ShapeDtypeStruct((R, W * C), x_nhwc.dtype)
        out_spec = pl.BlockSpec((TR, W * C), lambda r: (r, 0))
    else:
        # Fallback when W*cs is not lane-aligned: sublane-indexed stores.
        def kernel(x_ref, o_ref):
            for i in range(bs):
                chunk = x_ref[:, :, pl.ds(i * cs, cs)]            # (TR, W, cs)
                o_ref[:, i, :] = chunk.reshape(TR, W * cs)

        out_shape = jax.ShapeDtypeStruct((R, bs, W * cs), x_nhwc.dtype)
        out_spec = pl.BlockSpec((TR, bs, W * cs), lambda r: (r, 0, 0))

    out = pl.pallas_call(
        kernel,
        out_shape=out_shape,
        grid=(R // TR,),
        in_specs=[pl.BlockSpec((TR, W, C), lambda r: (r, 0, 0))],
        out_specs=out_spec,
        compiler_params=pltpu.CompilerParams(
            dimension_semantics=("parallel",),
            allow_input_fusion=[True],
            vmem_limit_bytes=vmem_limit,
        ),
        cost_estimate=cost,
    )(x_rows)
    return out.reshape(B, H * bs, W * bs, s_depth)   # free view


def depth_to_space_pallas(x, block_size, *, tile_rows=None):
    """x: (B, C, H, W) NCHW. Returns (B, C // bs^2, H*bs, W*bs) NCHW (PyTorch contract)."""
    bs = block_size
    if bs == 1:
        return x
    # NOTE: if the surrounding model can stay NHWC, call depth_to_space_nhwc_pallas
    # directly and skip both transposes (~3x less HBM traffic end to end).
    x_nhwc = jnp.transpose(x, (0, 2, 3, 1))
    out_nhwc = depth_to_space_nhwc_pallas(x_nhwc, bs, tile_rows=tile_rows)
    return jnp.transpose(out_nhwc, (0, 3, 1, 2))


def depth_to_space_ref(x, block_size):
    """Pure-JAX mirror of the PyTorch forward (reshape/split/stack chain)."""
    bs = block_size
    B, C, H, W = x.shape
    o = jnp.transpose(x, (0, 2, 3, 1))                 # (B, H, W, C)
    s_depth = C // (bs * bs)
    s_width = W * bs
    s_height = H * bs
    t1 = o.reshape(B, H, W, bs * bs, s_depth)
    spl = [t1[:, :, :, k * bs:(k + 1) * bs, :] for k in range(bs)]   # split(bs, dim=3)
    stack = [t.reshape(B, H, s_width, s_depth) for t in spl]
    st = jnp.stack(stack, axis=0)                      # (bs, B, H, sw, sd)
    st = jnp.transpose(st, (1, 0, 2, 3, 4))            # .transpose(0, 1)
    st = jnp.transpose(st, (0, 2, 1, 3, 4))            # .permute(0, 2, 1, 3, 4)
    out = st.reshape(B, s_height, s_width, s_depth)
    return jnp.transpose(out, (0, 3, 1, 2))            # NHWC -> NCHW


if __name__ == "__main__":
    key = jax.random.PRNGKey(0)
    block_size = 2

    # --- Shape 1: small cs (32 B) -> Path B (contiguous read, lane-dense stores) ---
    B, C, H, W = 2, 16, 16, 16
    x = jax.random.normal(key, (B, C, H, W), dtype=jnp.float32)

    fn = jax.jit(lambda a: depth_to_space_pallas(a, block_size))
    out = jax.block_until_ready(fn(x))
    ref = depth_to_space_ref(x, block_size)
    s_depth = C // (block_size * block_size)
    assert out.shape == (B, s_depth, H * block_size, W * block_size), out.shape
    assert out.dtype == x.dtype
    if not bool(jnp.array_equal(out, ref)):
        raise SystemExit("MISMATCH (path B, auto tile)")

    # Exercise a multi-step pipeline explicitly (8 rows/step -> grid of 4).
    out_tiled = jax.block_until_ready(
        depth_to_space_pallas(x, block_size, tile_rows=8))
    if not bool(jnp.array_equal(out_tiled, ref)):
        raise SystemExit("MISMATCH (path B, tiled)")

    # --- Shape 2: wide, lane-aligned cs (1 KiB segments) -> Path A (DMA gather) ---
    B2, C2, H2, W2 = 1, 512, 8, 8
    x2 = jax.random.normal(jax.random.PRNGKey(0), (B2, C2, H2, W2), dtype=jnp.float32)
    out2 = jax.block_until_ready(
        jax.jit(lambda a: depth_to_space_pallas(a, block_size))(x2))
    ref2 = depth_to_space_ref(x2, block_size)
    if not bool(jnp.array_equal(out2, ref2)):
        raise SystemExit("MISMATCH (path A, DMA-gather)")

    print("KERNEL_OK")
</pallas_src>

<mosaic_0001>
module attributes {stable_mosaic.version = 11 : i64} {
  func.func @kernel(%arg0: i32, %arg1: memref<16x16x16xf32, #tpu.memory_space<vmem>>, %arg2: memref<16x256xf32, #tpu.memory_space<vmem>>) attributes {dimension_semantics = [#tpu.dimension_semantics<parallel>], iteration_bounds = array<i64: 2>, scalar_prefetch = 0 : i64, scratch_operands = 0 : i64, tpu.core_type = #tpu.core_type<tc>, window_params = [{transform_indices = @transform_0, window_bounds = array<i64: 16, 16, 16>}, {transform_indices = @transform_1, window_bounds = array<i64: 16, 256>}]} {
    %c0 = arith.constant 0 : index
    %c0_0 = arith.constant 0 : index
    %c0_1 = arith.constant 0 : index
    %0 = vector.load %arg1[%c0, %c0_0, %c0_1] : memref<16x16x16xf32, #tpu.memory_space<vmem>>, vector<16x16x8xf32>
    %1 = vector.shape_cast %0 : vector<16x16x8xf32> to vector<16x128xf32>
    %c0_2 = arith.constant 0 : index
    %c0_3 = arith.constant 0 : index
    %2 = vector.load %arg2[%c0_2, %c0_3] : memref<16x256xf32, #tpu.memory_space<vmem>>, vector<16x128xf32>
    tpu.vector_store %arg2[%c0_2, %c0_3], %1 {strides = array<i32>} : memref<16x256xf32, #tpu.memory_space<vmem>>, vector<16x128xf32>,
    %c0_4 = arith.constant 0 : index
    %c0_5 = arith.constant 0 : index
    %c8 = arith.constant 8 : index
    %3 = vector.load %arg1[%c0_4, %c0_5, %c8] : memref<16x16x16xf32, #tpu.memory_space<vmem>>, vector<16x16x8xf32>
    %4 = vector.shape_cast %3 : vector<16x16x8xf32> to vector<16x128xf32>
    %c0_6 = arith.constant 0 : index
    %c128 = arith.constant 128 : index
    %5 = vector.load %arg2[%c0_6, %c128] : memref<16x256xf32, #tpu.memory_space<vmem>>, vector<16x128xf32>
    tpu.vector_store %arg2[%c0_6, %c128], %4 {strides = array<i32>} : memref<16x256xf32, #tpu.memory_space<vmem>>, vector<16x128xf32>,
    return
  }
  func.func @transform_0(%arg0: i32) -> (i32, i32, i32) {
    %c0_i32 = arith.constant 0 : i32
    %c0_i32_0 = arith.constant 0 : i32
    %c0_i32_1 = arith.constant 0 : i32
    return %arg0, %c0_i32, %c0_i32_0 : i32, i32, i32
  }
  func.func @transform_1(%arg0: i32) -> (i32, i32) {
    %c0_i32 = arith.constant 0 : i32
    %c0_i32_0 = arith.constant 0 : i32
    return %arg0, %c0_i32 : i32, i32
  }
}

</mosaic_0001>

<bundles_post_ra>
// kernel: _lambda_.1
= control target key start
LH: loop header
LB: loop body
LE: loop exit
PB: predicated region body
PF: predicated region fallthrough
CT: control target
= control target key end

     0   :  { %s1857_s6 = smov 0   ;;  %s2546_s0 = inlined_call_operand.vmem [shape: f32[32,16,16], index: 0, kind: input, shape index: {}]   ;;  %s2547_s1 = inlined_call_operand.vmem [shape: f32[32,256], index: 1, kind: output, shape index: {}]  }
   0x1 LB: > { %s1782_s7 = sadd.s32 4294967295, %s1828_s6   ;;  %p1786_p0 = scmp.ge.s32.totalorder %s1828_s6, 1  ;;  %s1828_s6 = sphi %s1857_s6, %s11_s6  }
   0x2   : > { %p89_p1 = scmp.lt.s32.totalorder %s1828_s6, 3 }
   0x4   : > { %p90_p2 = pnand %p1786_p0, %p89_p1 }
   0x6   : > { %93 = sbr.rel (%p90_p2) target bundleno = 420 (0x1a4), region = 24 }
   0xd   : > { %s1787_s8 = sshll.u32 %s1782_s7, 4  ;;  %v162_v0 = vlaneseq  ;;  %v1830_v1 = vmov 1983009808   ;;  %v1831_v3 = vmov 1934713408   ;;  %s1832_s13 = smov 16  }
   0xe   : > { %p112_p3 = scmp.lt.s32.totalorder %s1787_s8, 31  ;;  %v160_v2 = vunpack.c.l.s4 %v1830_v1  ;;  %v224_v4 = vunpack.c.l.s4 %v1831_v3  ;;  %s1833_s14 = smov 8   ;;  %vm821_vm0 = vcmask 64512   ;;  %vm824_vm1 = vcmask 130048  }
   0xf   : > { %v163_v5 = vshrl.u32 %v162_v0, 7  ;;  %s1834_s15 = smov 24   ;;  %s1835_s16 = smov 32   ;;  %vm827_vm2 = vcmask 195584   ;;  %vm830_vm3 = vcmask 261120   ;;  %vm833_vm4 = vcmask 326656  }
  0x10   : > { %s2553_s8 = smov (!%p112_p3, %s1787_s8), 31  ;;  %v161_v6 = vunpack.c.0.s8 %v160_v2  ;;  %v225_v7 = vunpack.c.0.s8 %v224_v4  ;;  %s1836_s17 = smov 40   ;;  %vm836_vm5 = vcmask 392192   ;;  %vm839_vm6 = vcmask 457728  }
  0x11   : > { %s1795_s9 = sshll.u32 %s2553_s8, 4  ;;  %s1837_s18 = smov 48   ;;  %vm842_vm7 = vcmask 523264   ;;  %vm845_vm8 = vcmask 588800   ;;  %vm848_vm9 = vcmask 654336   ;;  %vm851_vm10 = vcmask 719872  }
  0x12   : > { %s1870_s12 = scalar_lea.vmem %s2546_s0, %s1795_s9  ;;  %v1872_v8 = vsub.s32 %v161_v6, %v163_v5  ;;  %v1904_v20 = vsub.s32 %v225_v7, %v163_v5  ;;  %s1838_s19 = smov 56   ;;  %vm854_vm11 = vcmask 785408   ;;  %vm857_vm12 = vcmask 850944  }
  0x13   : > { %v1875_v9 = vld [vmem:[%s1870_s12] sm:$0xff]  ;;  %v1878_v10 = vld [vmem:[%s1870_s12 + $0x10] sm:$0xff]  ;;  %s1839_s20 = smov 64   ;;  %s1840_s21 = smov 72   ;;  %vm860_vm13 = vcmask 916480   ;;  %vm863_vm14 = vcmask 982016  }
  0x14   : > { %v1881_v11 = vld [vmem:[%s1870_s12 + $0x20] sm:$0xff]  ;;  %v1884_v12 = vld [vmem:[%s1870_s12 + $0x30] sm:$0xff]  ;;  %s1841_s22 = smov 80   ;;  %s1842_s23 = smov 120  }
  0x15   : > { %v1887_v13 = vld [vmem:[%s1870_s12 + $0x40] sm:$0xff]  ;;  %v1890_v14 = vld [vmem:[%s1870_s12 + $0x50] sm:$0xff]  ;;  %v157_v15 = vcombine.low %v1875_v9, %v1881_v11  ;;  %v158_v18 = vcombine.high %v1875_v9, %v1881_v11  ;;  %v173_v19 = vcombine.low %v1878_v10, %v1884_v12  ;;  %v174_v23 = vcombine.high %v1878_v10, %v1884_v12  ;;  %s1843_s24 = smov 88   ;;  %s1844_s25 = smov 96  }
  0x16   : > { %v1895_v16 = vld [vmem:[%s1870_s12 + $0x60] sm:$0xff]  ;;  %v1898_v17 = vld [vmem:[%s1870_s12 + $0x70] sm:$0xff]  ;;  %s1845_s26 = smov 104   ;;  %s1846_s27 = smov 112  }
  0x17   : > { %v1907_v21 = vld [vmem:[%s1870_s12 + $0x80] sm:$0xff]  ;;  %v165_v22 = vrot.slane %v157_v15, %v1872_v8  ;;  %v189_v24 = vcombine.low %v1887_v13, %v1895_v16  ;;  %v205_v25 = vcombine.low %v1890_v14, %v1898_v17  ;;  %v1917_v26 = vld [vmem:[%s1870_s12 + $0x90] sm:$0xff]  ;;  %v181_v29 = vrot.slane %v173_v19, %v1872_v8  ;;  %s1790_s28 = sshll.u32 %s1782_s7, 1 }
  0x18   : > { %v1920_v27 = vld [vmem:[%s1870_s12 + $0xa0] sm:$0xff]  ;;  %v1923_v28 = vld [vmem:[%s1870_s12 + $0xb0] sm:$0xff]  ;;  %v190_v30 = vcombine.high %v1887_v13, %v1895_v16  ;;  %v206_v53 = vcombine.high %v1890_v14, %v1898_v17  ;;  %v172_v7 = vrot.slane %v158_v18, %v1872_v8  ;;  %p119_p4 = scmp.lt.s32.totalorder %s1790_s28, 3 }
  0x19   : > { %v1929_v31 = vld [vmem:[%s1870_s12 + $0xc0] sm:$0xff]  ;;  %v1932_v32 = vld [vmem:[%s1870_s12 + $0xd0] sm:$0xff]  ;;  %v293_v34 = vcombine.low %v1907_v21, %v1920_v27  ;;  %v309_v35 = vcombine.low %v1917_v26, %v1923_v28  ;;  %v197_v36 = vrot.slane %v189_v24, %v1872_v8  ;;  %v213_v37 = vrot.slane %v205_v25, %v1872_v8 }
  0x1a   : > { %v1935_v33 = vld [vmem:[%s1870_s12 + $0xe0] sm:$0xff]  ;;  %v1944_v38 = vld [vmem:[%s1870_s12 + $0xf0] sm:$0xff]  ;;  %v294_v40 = vcombine.high %v1907_v21, %v1920_v27  ;;  %v222_v41 = vcombine.high %v165_v22, %v181_v29  ;;  %v221_v42 = vcombine.low %v165_v22, %v181_v29  ;;  %v310_v59 = vcombine.high %v1917_v26, %v1923_v28  ;;  %s2555_s28 = smov (!%p119_p4, %s1790_s28), 3 }
  0x1b   : > { %v325_v39 = vcombine.low %v1929_v31, %v1935_v33  ;;  %v301_v43 = vrot.slane %v293_v34, %v1872_v8  ;;  %v317_v44 = vrot.slane %v309_v35, %v1872_v8  ;;  %v254_v45 = vcombine.high %v197_v36, %v213_v37  ;;  %s1796_s29 = sshll.u32 %s2555_s28, 4 }
  0x1c   : > { %v253_v46 = vcombine.low %v197_v36, %v213_v37  ;;  %v341_v48 = vcombine.low %v1932_v32, %v1944_v38  ;;  %v1956_v49 = vrot.slane %v222_v41, %v1904_v20  ;;  %v1959_v50 = vrot.slane %v221_v42, %v1904_v20  ;;  %s2504_s3 = scalar_lea.vmem %s2547_s1, %s1796_s29 }
  0x1d   : > { %v333_v47 = vrot.slane %v325_v39, %v1872_v8  ;;  %v358_v51 = vcombine.high %v301_v43, %v317_v44  ;;  %v357_v52 = vcombine.low %v301_v43, %v317_v44  ;;  %v1964_v54 = vrot.slane %v254_v45, %v1904_v20  ;;  %v2013_v43 = vld [vmem:[%s1870_s12 + $0x98] sm:$0xff] }
  0x1e   : > { %v1967_v55 = vrot.slane %v253_v46, %v1904_v20  ;;  %v349_v56 = vrot.slane %v341_v48, %v1872_v8  ;;  %v308_v58 = vrot.slane %v294_v40, %v1872_v8  ;;  %v326_v60 = vcombine.high %v1929_v31, %v1935_v33  ;;  %v2016_v44 = vld [vmem:[%s1870_s12 + $0xb8] sm:$0xff] }
  0x1f   : > { %v372_v57 = vrot.slane %v358_v51, %v1904_v20  ;;  %v287_v61 = vcombine.low %v1956_v49, %v1964_v54  ;;  %v1983_v1 = vrot.slane %v357_v52, %v1904_v20  ;;  %v324_v3 = vrot.slane %v310_v59, %v1872_v8  ;;  %v2024_v51 = vld [vmem:[%s1870_s12 + $0xd8] sm:$0xff]  ;;  %v2027_v52 = vld [vmem:[%s1870_s12 + $0xe8] sm:$0xff] }
  0x20   : > { %2549 = vst [vmem:[#allocation2_spill] sm:$0xff] %v1967_v55  ;;  %v286_v62 = vcombine.high %v1959_v50, %v1967_v55  ;;  %v390_v0 = vcombine.high %v333_v47, %v349_v56  ;;  %v389_v2 = vcombine.low %v333_v47, %v349_v56  ;;  %v340_v4 = vrot.slane %v326_v60, %v1872_v8  ;;  %v2032_v56 = vld [vmem:[%s1870_s12 + $0xf8] sm:$0xff] }
  0x21   : > { %711 = vrot.lane.b32.xlu1 %v287_v61, %s1832_s13  ;;  %v342_v6 = vcombine.high %v1932_v32, %v1944_v38  ;;  %v373_v19 = vcombine.low %v308_v58, %v324_v3  ;;  %v188_v22 = vrot.slane %v174_v23, %v1872_v8  ;;  %v204_v24 = vrot.slane %v190_v30, %v1872_v8  ;;  %v2005_v23 = vld [vmem:[%s1870_s12 + $0x88] sm:$0xff]  ;;  %v2040_v59 = vld [vmem:[%s1870_s12 + $0x18] sm:$0xff] }
  0x22   : > { %703 = vrot.lane.b32.xlu0 %v286_v62, %s1833_s14  ;;  %v404_v5 = vrot.slane %v390_v0, %v1904_v20  ;;  %v1994_v15 = vrot.slane %v389_v2, %v1904_v20  ;;  %v220_v34 = vrot.slane %v206_v53, %v1872_v8  ;;  %v288_v18 = vcombine.high %v1956_v49, %v1964_v54  ;;  %v2008_v30 = vld [vmem:[%s1870_s12 + $0xa8] sm:$0xff]  ;;  %v2048_v62 = vld [vmem:[%s1870_s12 + $0x38] sm:$0xff] }
  0x23   : > { %v356_v29 = vrot.slane %v342_v6, %v1872_v8  ;;  %v237_v37 = vcombine.low %v172_v7, %v188_v22  ;;  %v381_v39 = vrot.slane %v373_v19, %v1904_v20  ;;  %v374_v42 = vcombine.high %v308_v58, %v324_v3  ;;  %v2021_v49 = vld [vmem:[%s1870_s12 + $0xc8] sm:$0xff] }
  0x24   : > { %v423_v25 = vcombine.low %v372_v57, %v404_v5  ;;  %v422_v35 = vcombine.high %v1983_v1, %v1994_v15  ;;  %v424_v36 = vcombine.high %v372_v57, %v404_v5  ;;  %v269_v41 = vcombine.low %v204_v24, %v220_v34  ;;  %v2037_v58 = vld [vmem:[%s1870_s12 + $0x8] sm:$0xff]  ;;  %v2058_v5 = vld [vmem:[%s1870_s12 + $0x58] sm:$0xff] }
  0x25   : > { %v405_v40 = vcombine.low %v340_v4, %v356_v29  ;;  %v245_v45 = vrot.slane %v237_v37, %v1904_v20  ;;  %v406_v46 = vcombine.high %v340_v4, %v356_v29  ;;  %v238_v47 = vcombine.high %v172_v7, %v188_v22  ;;  %v2045_v61 = vld [vmem:[%s1870_s12 + $0x28] sm:$0xff]  ;;  %v2064_v7 = vld [vmem:[%s1870_s12 + $0x78] sm:$0xff] }
  0x26   : > { %713 = vrot.lane.b32.xlu1 %v423_v25, %s1832_s13  ;;  %705 = vrot.lane.b32.xlu0 %v422_v35, %s1833_s14  ;;  %v270_v48 = vcombine.high %v204_v24, %v220_v34  ;;  %v277_v54 = vrot.slane %v269_v41, %v1904_v20  ;;  %v565_v57 = vcombine.low %v2005_v23, %v2008_v30  ;;  %v2051_v0 = vld [vmem:[%s1870_s12 + $0x48] sm:$0xff] }
  0x27   : > { %v413_v53 = vrot.slane %v405_v40, %v1904_v20  ;;  %v581_v60 = vcombine.low %v2013_v43, %v2016_v44  ;;  %v388_v3 = vrot.slane %v374_v42, %v1904_v20  ;;  %v597_v4 = vcombine.low %v2021_v49, %v2027_v52  ;;  %v2061_v6 = vld [vmem:[%s1870_s12 + $0x68] sm:$0xff] }
  0x28   : > { %v289_v19 = vcombine.low %v245_v45, %v277_v54  ;;  %v420_v22 = vrot.slane %v406_v46, %v1904_v20  ;;  %v252_v24 = vrot.slane %v238_v47, %v1904_v20  ;;  %v284_v25 = vrot.slane %v270_v48, %v1904_v20 }
  0x29   : > { %v425_v2 = vcombine.low %v381_v39, %v413_v53  ;;  %v573_v29 = vrot.slane %v565_v57, %v1872_v8  ;;  %v589_v34 = vrot.slane %v581_v60, %v1872_v8  ;;  %v613_v35 = vcombine.low %v2024_v51, %v2032_v56 }
  0x2a   : > { %721 = vrot.lane.b32.xlu1 %v424_v36, %s1834_s15  ;;  %719 = vrot.lane.b32.xlu0 %v288_v18, %s1834_s15  ;;  %v429_v36 = vcombine.low %v2037_v58, %v2045_v61  ;;  %v426_v37 = vcombine.high %v381_v39, %v413_v53  ;;  %v445_v18 = vcombine.low %v2040_v59, %v2048_v62 }
  0x2b   : > { %v461_v40 = vcombine.low %v2051_v0, %v2061_v6  ;;  %v477_v41 = vcombine.low %v2058_v5, %v2064_v7  ;;  %v290_v42 = vcombine.high %v245_v45, %v277_v54  ;;  %v605_v46 = vrot.slane %v597_v4, %v1872_v8 }
  0x2c   : > { %v621_v47 = vrot.slane %v613_v35, %v1872_v8  ;;  %v630_v48 = vcombine.high %v573_v29, %v589_v34  ;;  %v437_v39 = vrot.slane %v429_v36, %v1872_v8  ;;  %v453_v53 = vrot.slane %v445_v18, %v1872_v8 }
  0x2d   : > { %v469_v57 = vrot.slane %v461_v40, %v1872_v8  ;;  %v485_v60 = vrot.slane %v477_v41, %v1872_v8  ;;  %v427_v55 = vcombine.low %v388_v3, %v420_v22  ;;  %v629_v45 = vcombine.low %v573_v29, %v589_v34 }
  0x2e   : > { %729 = vrot.lane.b32.xlu1 %v425_v2, %s1835_s16  ;;  %727 = vrot.lane.b32.xlu0 %v289_v19, %s1835_s16  ;;  %v662_v63 = vcombine.high %v605_v46, %v621_v47  ;;  %v661_v54 = vcombine.low %v605_v46, %v621_v47  ;;  %v2092_v2 = vrot.slane %v630_v48, %v1904_v20 }
  0x2f   : > { %v291_v19 = vcombine.low %v252_v24, %v284_v25  ;;  %v493_v35 = vcombine.low %v437_v39, %v453_v53  ;;  %v525_v36 = vcombine.low %v469_v57, %v485_v60  ;;  %v637_v29 = vrot.slane %v629_v45, %v1904_v20 }
  0x30   : > { %v2095_v4 = vrot.slane %v662_v63, %v1904_v20  ;;  %v669_v34 = vrot.slane %v661_v54, %v1904_v20  ;;  %v421_v63 = vcombine.low %v1983_v1, %v1994_v15  ;;  %v292_v40 = vcombine.high %v252_v24, %v284_v25 }
  0x31   : > { %v501_v41 = vrot.slane %v493_v35, %v1904_v20 }
  0x32   : > { %737 = vrot.lane.b32.xlu1 %v426_v37, %s1836_s17  ;;  %735 = vrot.lane.b32.xlu0 %v290_v42, %s1836_s17  ;;  %v696_v18 = vcombine.high %v2092_v2, %v2095_v4  ;;  %v428_v37 = vcombine.high %v388_v3, %v420_v22  ;;  %v533_v42 = vrot.slane %v525_v36, %v1904_v20 }
  0x33   : > { %v693_v46 = vcombine.low %v637_v29, %v669_v34  ;;  %v494_v3 = vcombine.high %v437_v39, %v453_v53  ;;  %v526_v22 = vcombine.high %v469_v57, %v485_v60  ;;  %v694_v47 = vcombine.high %v637_v29, %v669_v34 }
  0x34   : > { %v558_v24 = vcombine.high %v501_v41, %v533_v42  ;;  %v695_v45 = vcombine.low %v2092_v2, %v2095_v4 }
  0x35   : > { %v508_v25 = vrot.slane %v494_v3, %v1904_v20  ;;  %v540_v48 = vrot.slane %v526_v22, %v1904_v20 }
  0x36   : > { %745 = vrot.lane.b32.xlu1 %v427_v55, %s1837_s18  ;;  %743 = vrot.lane.b32.xlu0 %v291_v19, %s1837_s18  ;;  %v557_v55 = vcombine.low %v501_v41, %v533_v42 }
  0x37   : > { %v559_v39 = vcombine.low %v508_v25, %v540_v48  ;;  %v560_v53 = vcombine.high %v508_v25, %v540_v48 }
  0x3a   : > { %753 = vrot.lane.b32.xlu1 %v428_v37, %s1838_s19  ;;  %751 = vrot.lane.b32.xlu0 %v292_v40, %s1838_s19 }
  0x3e   : > { %761 = vrot.lane.b32.xlu1 %v693_v46, %s1839_s20  ;;  %759 = vrot.lane.b32.xlu0 %v557_v55, %s1839_s20 }
  0x42   : > { %769 = vrot.lane.b32.xlu1 %v694_v47, %s1840_s21  ;;  %767 = vrot.lane.b32.xlu0 %v558_v24, %s1840_s21 }
  0x46   : > { %777 = vrot.lane.b32.xlu1 %v695_v45, %s1841_s22  ;;  %775 = vrot.lane.b32.xlu0 %v559_v39, %s1841_s22 }
  0x4a   : > { %932 = vrot.lane.b32.xlu1 %v1875_v9, %s1842_s23  ;;  %783 = vrot.lane.b32.xlu0 %v560_v53, %s1843_s24  ;;  %v430_v9 = vcombine.high %v2037_v58, %v2045_v61 }
  0x4e   : > { %940 = vrot.lane.b32.xlu1 %v1881_v11, %s1842_s23  ;;  %936 = vrot.lane.b32.xlu0 %v1878_v10, %s1842_s23  ;;  %v446_v10 = vcombine.high %v2040_v59, %v2048_v62  ;;  %v462_v11 = vcombine.high %v2051_v0, %v2061_v6 }
  0x52   : > { %948 = vrot.lane.b32.xlu1 %v1887_v13, %s1842_s23  ;;  %944 = vrot.lane.b32.xlu0 %v1884_v12, %s1842_s23  ;;  %v478_v12 = vcombine.high %v2058_v5, %v2064_v7  ;;  %v2184_v13 = vrot.slane %v430_v9, %v1872_v8 }
  0x56   : > { %956 = vrot.lane.b32.xlu1 %v1895_v16, %s1842_s23  ;;  %952 = vrot.lane.b32.xlu0 %v1890_v14, %s1842_s23  ;;  %v2187_v14 = vrot.slane %v446_v10, %v1872_v8  ;;  %v2190_v16 = vrot.slane %v462_v11, %v1872_v8 }
  0x5a   : > { %964 = vrot.lane.b32.xlu1 %v1907_v21, %s1842_s23  ;;  %960 = vrot.lane.b32.xlu0 %v1898_v17, %s1842_s23  ;;  %v2193_v17 = vrot.slane %v478_v12, %v1872_v8  ;;  %v509_v21 = vcombine.low %v2184_v13, %v2187_v14 }
  0x5e   : > { %972 = vrot.lane.b32.xlu1 %v1920_v27, %s1842_s23  ;;  %968 = vrot.lane.b32.xlu0 %v1917_v26, %s1842_s23  ;;  %v541_v26 = vcombine.low %v2190_v16, %v2193_v17  ;;  %v2208_v27 = vrot.slane %v509_v21, %v1904_v20 }
  0x62   : > { %980 = vrot.lane.b32.xlu1 %v1929_v31, %s1842_s23  ;;  %976 = vrot.lane.b32.xlu0 %v1923_v28, %s1842_s23  ;;  %v2211_v28 = vrot.slane %v541_v26, %v1904_v20 }
  0x64   : > { %v561_v31 = vcombine.low %v2208_v27, %v2211_v28 }
  0x66   : > { %988 = vrot.lane.b32.xlu1 %v1935_v33, %s1842_s23  ;;  %984 = vrot.lane.b32.xlu0 %v1932_v32, %s1842_s23 }
  0x6a   : > { %934 = vrot.lane.b32.xlu1 %v2037_v58, %s1842_s23  ;;  %992 = vrot.lane.b32.xlu0 %v1944_v38, %s1842_s23  ;;  %v2550_v38 = vld [vmem:[#allocation2_spill] sm:$0xff] }
  0x6b   : > { %v2551_v58 = vcombine.low %v1959_v50, %v2550_v38 }
  0x6e   : > { %942 = vrot.lane.b32.xlu1 %v2045_v61, %s1842_s23  ;;  %938 = vrot.lane.b32.xlu0 %v2040_v59, %s1842_s23 }
  0x72   : > { %950 = vrot.lane.b32.xlu1 %v2051_v0, %s1842_s23  ;;  %946 = vrot.lane.b32.xlu0 %v2048_v62, %s1842_s23 }
  0x76   : > { %958 = vrot.lane.b32.xlu1 %v2061_v6, %s1842_s23  ;;  %954 = vrot.lane.b32.xlu0 %v2058_v5, %s1842_s23 }
  0x7a   : > { %966 = vrot.lane.b32.xlu1 %v2005_v23, %s1842_s23  ;;  %962 = vrot.lane.b32.xlu0 %v2064_v7, %s1842_s23 }
  0x7e   : > { %974 = vrot.lane.b32.xlu1 %v2008_v30, %s1842_s23  ;;  %970 = vrot.lane.b32.xlu0 %v2013_v43, %s1842_s23 }
  0x82   : > { %982 = vrot.lane.b32.xlu1 %v2021_v49, %s1842_s23  ;;  %978 = vrot.lane.b32.xlu0 %v2016_v44, %s1842_s23 }
  0x86   : > { %990 = vrot.lane.b32.xlu1 %v2027_v52, %s1842_s23  ;;  %986 = vrot.lane.b32.xlu0 %v2024_v51, %s1842_s23 }
  0x8a   : > { %785 = vrot.lane.b32.xlu1 %v696_v18, %s1843_s24  ;;  %994 = vrot.lane.b32.xlu0 %v2032_v56, %s1842_s23 }
  0x8e   : > { %791 = vrot.lane.b32.xlu0 %v561_v31, %s1844_s25 }
  0x93   : > { %v712_v32 = vpop.permute.xlu1 %711 }
  0x94   : > { %v704_v33 = vpop.permute.xlu0 %703 }
  0x95   : > { %v822_v59 = vsel %vm821_vm0, %v2551_v58, %v704_v33 }
  0x96   : > { %v825_v61 = vsel %vm824_vm1, %v822_v59, %v712_v32 }
  0x98   : > { %v714_v62 = vpop.permute.xlu1 %713  ;;  %v706_v0 = vpop.permute.xlu0 %705 }
  0x99   : > { %v823_v5 = vsel %vm821_vm0, %v421_v63, %v706_v0 }
  0x9a   : > { %v826_v6 = vsel %vm824_vm1, %v823_v5, %v714_v62 }
  0x9c   : > { %v722_v7 = vpop.permute.xlu1 %721  ;;  %v720_v60 = vpop.permute.xlu0 %719 }
  0x9d   : > { %v829_v57 = vsel %vm827_vm2, %v826_v6, %v722_v7  ;;  %v828_v50 = vsel %vm827_vm2, %v825_v61, %v720_v60 }
  0xa0   : > { %v730_v54 = vpop.permute.xlu1 %729  ;;  %v728_v4 = vpop.permute.xlu0 %727 }
  0xa1   : > { %v832_v2 = vsel %vm830_vm3, %v829_v57, %v730_v54  ;;  %v831_v19 = vsel %vm830_vm3, %v828_v50, %v728_v4 }
  0xa4   : > { %v738_v1 = vpop.permute.xlu1 %737  ;;  %v736_v35 = vpop.permute.xlu0 %735 }
  0xa5   : > { %v835_v15 = vsel %vm833_vm4, %v832_v2, %v738_v1  ;;  %v834_v36 = vsel %vm833_vm4, %v831_v19, %v736_v35 }
  0xa8   : > { %v746_v18 = vpop.permute.xlu1 %745  ;;  %v744_v29 = vpop.permute.xlu0 %743 }
  0xa9   : > { %v838_v37 = vsel %vm836_vm5, %v835_v15, %v746_v18  ;;  %v837_v34 = vsel %vm836_vm5, %v834_v36, %v744_v29 }
  0xac   : > { %v754_v63 = vpop.permute.xlu1 %753  ;;  %v752_v41 = vpop.permute.xlu0 %751 }
  0xad   : > { %v841_v40 = vsel %vm839_vm6, %v838_v37, %v754_v63  ;;  %v840_v42 = vsel %vm839_vm6, %v837_v34, %v752_v41 }
  0xb0   : > { %v762_v46 = vpop.permute.xlu1 %761  ;;  %v760_v3 = vpop.permute.xlu0 %759 }
  0xb1   : > { %v844_v55 = vsel %vm842_vm7, %v841_v40, %v762_v46  ;;  %v843_v22 = vsel %vm842_vm7, %v840_v42, %v760_v3 }
  0xb4   : > { %v770_v47 = vpop.permute.xlu1 %769  ;;  %v768_v25 = vpop.permute.xlu0 %767 }
  0xb5   : > { %v847_v24 = vsel %vm845_vm8, %v844_v55, %v770_v47  ;;  %v846_v48 = vsel %vm845_vm8, %v843_v22, %v768_v25 }
  0xb8   : > { %v778_v45 = vpop.permute.xlu1 %777  ;;  %v776_v53 = vpop.permute.xlu0 %775 }
  0xb9   : > { %v2247_v39 = vsel %vm848_vm9, %v847_v24, %v778_v45  ;;  %v849_v9 = vsel %vm848_vm9, %v846_v48, %v776_v53 }
  0xbc   : > { %v933_v10 = vpop.permute.xlu1 %932  ;;  %v784_v11 = vpop.permute.xlu0 %783 }
  0xbd   : > { %v2251_v12 = vsel %vm851_vm10, %v849_v9, %v784_v11 }
  0xc0   : > { %v941_v21 = vpop.permute.xlu1 %940  ;;  %v937_v26 = vpop.permute.xlu0 %936 }
  0xc1   : > { %v1028_v59 = vcombine.low %v933_v10, %v941_v21  ;;  %v1029_v63 = vcombine.high %v933_v10, %v941_v21 }
  0xc3   : > { %v1036_v6 = vrot.slane %v1028_v59, %v1872_v8  ;;  %v1043_v48 = vrot.slane %v1029_v63, %v1872_v8 }
  0xc4   : > { %v949_v31 = vpop.permute.xlu1 %948  ;;  %v945_v32 = vpop.permute.xlu0 %944 }
  0xc5   : > { %v1044_v33 = vcombine.low %v937_v26, %v945_v32  ;;  %v1045_v15 = vcombine.high %v937_v26, %v945_v32 }
  0xc7   : > { %v1052_v61 = vrot.slane %v1044_v33, %v1872_v8  ;;  %v1059_v46 = vrot.slane %v1045_v15, %v1872_v8 }
  0xc8   : > { %v957_v38 = vpop.permute.xlu1 %956  ;;  %v953_v58 = vpop.permute.xlu0 %952 }
  0xc9   : > { %v1060_v62 = vcombine.low %v949_v31, %v957_v38  ;;  %v1092_v57 = vcombine.low %v1036_v6, %v1052_v61  ;;  %v1093_v35 = vcombine.high %v1036_v6, %v1052_v61  ;;  %v1061_v36 = vcombine.high %v949_v31, %v957_v38 }
  0xca   : > { %v1108_v10 = vcombine.low %v1043_v48, %v1059_v46 }
  0xcb   : > { %v1068_v60 = vrot.slane %v1060_v62, %v1872_v8  ;;  %v2264_v37 = vrot.slane %v1092_v57, %v1904_v20  ;;  %v1075_v55 = vrot.slane %v1061_v36, %v1872_v8  ;;  %v1107_v47 = vrot.slane %v1093_v35, %v1904_v20 }
  0xcc   : > { %v2254_v0 = vpop.permute.xlu1 %964  ;;  %v961_v5 = vpop.permute.xlu0 %960  ;;  %v1116_v6 = vrot.slane %v1108_v10, %v1904_v20 }
  0xcd   : > { %v1076_v7 = vcombine.low %v953_v58, %v961_v5  ;;  %v1077_v4 = vcombine.high %v953_v58, %v961_v5 }
  0xcf   : > { %v1084_v50 = vrot.slane %v1076_v7, %v1872_v8  ;;  %v1091_v40 = vrot.slane %v1077_v4, %v1872_v8 }
  0xd0   : > { %v2259_v54 = vpop.permute.xlu1 %972  ;;  %v2261_v2 = vpop.permute.xlu0 %968 }
  0xd1   : > { %v1124_v19 = vcombine.low %v1068_v60, %v1084_v50  ;;  %v1125_v1 = vcombine.high %v1068_v60, %v1084_v50  ;;  %v1140_v45 = vcombine.low %v1075_v55, %v1091_v40  ;;  %v1164_v53 = vcombine.low %v2254_v0, %v2259_v54 }
  0xd2   : > { %v1141_v7 = vcombine.high %v1075_v55, %v1091_v40 }
  0xd3   : > { %v2267_v29 = vrot.slane %v1124_v19, %v1904_v20  ;;  %v1139_v42 = vrot.slane %v1125_v1, %v1904_v20  ;;  %v1172_v32 = vrot.slane %v1164_v53, %v1872_v8  ;;  %v1148_v58 = vrot.slane %v1140_v45, %v1904_v20 }
  0xd4   : > { %v981_v18 = vpop.permute.xlu1 %980  ;;  %v977_v34 = vpop.permute.xlu0 %976  ;;  %v1109_v1 = vcombine.high %v1043_v48, %v1059_v46  ;;  %v1155_v46 = vrot.slane %v1141_v7, %v1904_v20 }
  0xd5   : > { %v1157_v41 = vcombine.high %v2264_v37, %v2267_v29  ;;  %v1180_v3 = vcombine.low %v2261_v2, %v977_v34  ;;  %v1156_v24 = vcombine.low %v2264_v37, %v2267_v29  ;;  %v1158_v9 = vcombine.low %v1107_v47, %v1139_v42 }
  0xd6   : > { %v1159_v38 = vcombine.high %v1107_v47, %v1139_v42  ;;  %v1160_v19 = vcombine.low %v1116_v6, %v1148_v58  ;;  %v1181_v15 = vcombine.high %v2261_v2, %v977_v34  ;;  %v1165_v42 = vcombine.high %v2254_v0, %v2259_v54 }
  0xd7   : > { %1574 = vrot.lane.b32.xlu1 %v1157_v41, %s1833_s14  ;;  %v1188_v11 = vrot.slane %v1180_v3, %v1872_v8  ;;  %v1123_v47 = vrot.slane %v1109_v1, %v1904_v20 }
  0xd8   : > { %v989_v22 = vpop.permute.xlu1 %988  ;;  %v985_v25 = vpop.permute.xlu0 %984  ;;  %v1179_v45 = vrot.slane %v1165_v42, %v1872_v8 }
  0xd9   : > { %v1196_v21 = vcombine.low %v981_v18, %v989_v22  ;;  %v1228_v59 = vcombine.low %v1172_v32, %v1188_v11  ;;  %v1229_v35 = vcombine.high %v1172_v32, %v1188_v11  ;;  %v1197_v36 = vcombine.high %v981_v18, %v989_v22 }
  0xda   : > { %v1161_v18 = vcombine.high %v1116_v6, %v1148_v58  ;;  %v1195_v22 = vrot.slane %v1181_v15, %v1872_v8 }
  0xdb   : > { %1582 = vrot.lane.b32.xlu1 %v1158_v9, %s1832_s13  ;;  %v1204_v61 = vrot.slane %v1196_v21, %v1872_v8  ;;  %v2302_v41 = vrot.slane %v1228_v59, %v1904_v20  ;;  %v1243_v48 = vrot.slane %v1229_v35, %v1904_v20  ;;  %v1162_v21 = vcombine.low %v1123_v47, %v1155_v46 }
  0xdc   : > { %v2285_v26 = vpop.permute.xlu1 %934  ;;  %v993_v31 = vpop.permute.xlu0 %992  ;;  %v1244_v32 = vcombine.low %v1179_v45, %v1195_v22 }
  0xdd   : > { %v1212_v33 = vcombine.low %v985_v25, %v993_v31  ;;  %v1213_v60 = vcombine.high %v985_v25, %v993_v31  ;;  %v1211_v25 = vrot.slane %v1197_v36, %v1872_v8 }
  0xdf   : > { %v1220_v62 = vrot.slane %v1212_v33, %v1872_v8  ;;  %1590 = vrot.lane.b32.xlu1 %v1159_v38, %s1834_s15  ;;  %v1227_v2 = vrot.slane %v1213_v60, %v1872_v8 }
  0xe0   : > { %v2292_v5 = vpop.permute.xlu1 %942  ;;  %v2295_v57 = vpop.permute.xlu0 %938 }
  0xe1   : > { %v1260_v50 = vcombine.low %v1204_v61, %v1220_v62  ;;  %v1261_v4 = vcombine.high %v1204_v61, %v1220_v62  ;;  %v1276_v10 = vcombine.low %v1211_v25, %v1227_v2  ;;  %v1300_v11 = vcombine.low %v2285_v26, %v2292_v5 }
  0xe2   : > { %v1163_v61 = vcombine.high %v1123_v47, %v1155_v46  ;;  %v1277_v35 = vcombine.high %v1211_v25, %v1227_v2 }
  0xe3   : > { %1598 = vrot.lane.b32.xlu1 %v1160_v19, %s1835_s16  ;;  %v2305_v40 = vrot.slane %v1260_v50, %v1904_v20  ;;  %v1275_v3 = vrot.slane %v1261_v4, %v1904_v20  ;;  %v1308_v62 = vrot.slane %v1300_v11, %v1872_v8  ;;  %v1284_v60 = vrot.slane %v1276_v10, %v1904_v20 }
  0xe4   : > { %v2299_v63 = vpop.permute.xlu1 %950  ;;  %v2309_v55 = vpop.permute.xlu0 %946  ;;  %v1252_v50 = vrot.slane %v1244_v32, %v1904_v20 }
  0xe5   : > { %v1293_v34 = vcombine.high %v2302_v41, %v2305_v40  ;;  %v1316_v0 = vcombine.low %v2295_v57, %v2309_v55  ;;  %v1292_v9 = vcombine.low %v2302_v41, %v2305_v40  ;;  %v1294_v31 = vcombine.low %v1243_v48, %v1275_v3 }
  0xe6   : > { %v1295_v7 = vcombine.high %v1243_v48, %v1275_v3  ;;  %v1296_v46 = vcombine.low %v1252_v50, %v1284_v60  ;;  %v1291_v48 = vrot.slane %v1277_v35, %v1904_v20  ;;  %v1297_v2 = vcombine.high %v1252_v50, %v1284_v60 }
  0xe7   : > { %1606 = vrot.lane.b32.xlu1 %v1161_v18, %s1836_s17  ;;  %1576 = vrot.lane.b32.xlu0 %v1293_v34, %s1833_s14  ;;  %v1324_v33 = vrot.slane %v1316_v0, %v1872_v8  ;;  %v1245_v18 = vcombine.high %v1179_v45, %v1195_v22 }
  0xe8   : > { %v959_v54 = vpop.permute.xlu1 %958  ;;  %v955_v53 = vpop.permute.xlu0 %954 }
  0xe9   : > { %v1332_v38 = vcombine.low %v2299_v63, %v959_v54  ;;  %v1364_v4 = vcombine.low %v1308_v62, %v1324_v33  ;;  %v1333_v22 = vcombine.high %v2299_v63, %v959_v54  ;;  %v1259_v45 = vrot.slane %v1245_v18, %v1904_v20 }
  0xeb   : > { %1614 = vrot.lane.b32.xlu1 %v1162_v21, %s1837_s18  ;;  %1584 = vrot.lane.b32.xlu0 %v1294_v31, %s1832_s13  ;;  %v1340_v19 = vrot.slane %v1332_v38, %v1872_v8  ;;  %v1372_v3 = vrot.slane %v1364_v4, %v1904_v20  ;;  %v1317_v21 = vcombine.high %v2295_v57, %v2309_v55 }
  0xec   : > { %v2333_v58 = vpop.permute.xlu1 %966  ;;  %v963_v59 = vpop.permute.xlu0 %962  ;;  %v1365_v31 = vcombine.high %v1308_v62, %v1324_v33  ;;  %v1298_v57 = vcombine.low %v1259_v45, %v1291_v48  ;;  %v2378_v62 = vrot.slane %v1333_v22, %v1872_v8  ;;  %v1299_v50 = vcombine.high %v1259_v45, %v1291_v48 }
  0xed   : > { %v1348_v6 = vcombine.low %v955_v53, %v963_v59  ;;  %v1349_v10 = vcombine.high %v955_v53, %v963_v59  ;;  %v1301_v53 = vcombine.high %v2285_v26, %v2292_v5 }
  0xef   : > { %v1356_v1 = vrot.slane %v1348_v6, %v1872_v8  ;;  %1622 = vrot.lane.b32.xlu1 %v1163_v61, %s1838_s19  ;;  %1592 = vrot.lane.b32.xlu0 %v1295_v7, %s1834_s15  ;;  %v2369_v63 = vrot.slane %v1349_v10, %v1872_v8  ;;  %v2375_v61 = vrot.slane %v1317_v21, %v1872_v8 }
  0xf0   : > { %v2342_v15 = vpop.permute.xlu1 %974  ;;  %v2344_v36 = vpop.permute.xlu0 %970  ;;  %v1379_v6 = vrot.slane %v1365_v31, %v1904_v20  ;;  %v2387_v7 = vrot.slane %v1301_v53, %v1872_v8  ;;  %v614_v21 = vcombine.high %v2024_v51, %v2032_v56 }
  0xf1   : > { %v1396_v42 = vcombine.low %v1340_v19, %v1356_v1  ;;  %v1397_v11 = vcombine.high %v1340_v19, %v1356_v1  ;;  %v1436_v55 = vcombine.low %v2333_v58, %v2342_v15  ;;  %v1412_v4 = vcombine.low %v2378_v62, %v2369_v63 }
  0xf2   : > { %v628_v56 = vrot.slane %v614_v21, %v1872_v8 }
  0xf3   : > { %1600 = vrot.lane.b32.xlu0 %v1296_v46, %s1835_s16  ;;  %v1404_v47 = vrot.slane %v1396_v42, %v1904_v20  ;;  %v1411_v33 = vrot.slane %v1397_v11, %v1904_v20  ;;  %v1444_v19 = vrot.slane %v1436_v55, %v1872_v8  ;;  %v1380_v42 = vcombine.low %v2387_v7, %v2375_v61 }
  0xf4   : > { %v2347_v34 = vpop.permute.xlu1 %982  ;;  %v2351_v0 = vpop.permute.xlu0 %978  ;;  %v1420_v10 = vrot.slane %v1412_v4, %v1904_v20  ;;  %v566_v11 = vcombine.high %v2005_v23, %v2008_v30  ;;  %v510_v23 = vcombine.high %v2184_v13, %v2187_v14  ;;  %v562_v13 = vcombine.high %v2208_v27, %v2211_v28 }
  0xf5   : > { %v1428_v25 = vcombine.low %v1372_v3, %v1404_v47  ;;  %v1452_v32 = vcombine.low %v2344_v36, %v2351_v0  ;;  %v1429_v54 = vcombine.high %v1372_v3, %v1404_v47  ;;  %v1430_v35 = vcombine.low %v1379_v6, %v1411_v33 }
  0xf6   : > { %v1431_v48 = vcombine.high %v1379_v6, %v1411_v33  ;;  %v1388_v22 = vrot.slane %v1380_v42, %v1904_v20 }
  0xf7   : > { %1608 = vrot.lane.b32.xlu0 %v1297_v2, %s1836_s17  ;;  %1630 = vrot.lane.b32.xlu1 %v1428_v25, %s1839_s20  ;;  %v1460_v26 = vrot.slane %v1452_v32, %v1872_v8  ;;  %v582_v2 = vcombine.high %v2013_v43, %v2016_v44  ;;  %v598_v25 = vcombine.high %v2021_v49, %v2027_v52 }
  0xf8   : > { %v2364_v38 = vpop.permute.xlu1 %990  ;;  %v2366_v59 = vpop.permute.xlu0 %986  ;;  %v1432_v32 = vcombine.low %v1388_v22, %v1420_v10  ;;  %v542_v44 = vcombine.high %v2190_v16, %v2193_v17  ;;  %v2417_v49 = vrot.slane %v566_v11, %v1872_v8 }
  0xf9   : > { %v1468_v5 = vcombine.low %v2347_v34, %v2364_v38  ;;  %v1500_v46 = vcombine.low %v1444_v19, %v1460_v26  ;;  %v2420_v51 = vrot.slane %v582_v2, %v1872_v8  ;;  %v2423_v52 = vrot.slane %v598_v25, %v1872_v8 }
  0xfa   : > { %v1501_v53 = vcombine.high %v1444_v19, %v1460_v26  ;;  %v556_v55 = vrot.slane %v542_v44, %v1904_v20  ;;  %v1453_v26 = vcombine.high %v2344_v36, %v2351_v0  ;;  %v1469_v27 = vcombine.high %v2347_v34, %v2364_v38 }
  0xfb   : > { %1616 = vrot.lane.b32.xlu0 %v1298_v57, %s1837_s18  ;;  %1638 = vrot.lane.b32.xlu1 %v1429_v54, %s1840_s21  ;;  %v1476_v18 = vrot.slane %v1468_v5, %v1872_v8  ;;  %v1508_v45 = vrot.slane %v1500_v46, %v1904_v20  ;;  %v524_v57 = vrot.slane %v510_v23, %v1904_v20 }
  0xfc   : > { %v995_v60 = vpop.permute.xlu0 %994  ;;  %v645_v54 = vcombine.low %v2417_v49, %v2420_v51  ;;  %v677_v33 = vcombine.low %v2423_v52, %v628_v56  ;;  %v1515_v28 = vrot.slane %v1501_v53, %v1904_v20  ;;  %v1413_v5 = vcombine.high %v2378_v62, %v2369_v63  ;;  %v2482_v44 = vpop.permute.xlu1 %785 }
  0xfd   : > { %v1484_v1 = vcombine.low %v2366_v59, %v995_v60  ;;  %v1485_v14 = vcombine.high %v2366_v59, %v995_v60  ;;  %v1437_v59 = vcombine.high %v2333_v58, %v2342_v15  ;;  %v1433_v60 = vcombine.high %v1388_v22, %v1420_v10 }
  0xfe   : > { %v563_v0 = vcombine.low %v524_v57, %v556_v55  ;;  %v653_v34 = vrot.slane %v645_v54, %v1904_v20  ;;  %v685_v38 = vrot.slane %v677_v33, %v1904_v20  ;;  %v1467_v4 = vrot.slane %v1453_v26, %v1872_v8 }
  0xff   : > { %v1492_v3 = vrot.slane %v1484_v1, %v1872_v8  ;;  %1624 = vrot.lane.b32.xlu0 %v1299_v50, %s1838_s19  ;;  %1646 = vrot.lane.b32.xlu1 %v1430_v35, %s1841_s22  ;;  %v1499_v6 = vrot.slane %v1485_v14, %v1872_v8  ;;  %v1381_v50 = vcombine.high %v2387_v7, %v2375_v61 }
 0x100   : > { %v1483_v19 = vrot.slane %v1469_v27, %v1872_v8  ;;  %v1451_v58 = vrot.slane %v1437_v59, %v1872_v8  ;;  %v1427_v62 = vrot.slane %v1413_v5, %v1904_v20  ;;  %v697_v7 = vcombine.low %v653_v34, %v685_v38 }
 0x101   : > { %v1532_v47 = vcombine.low %v1476_v18, %v1492_v3  ;;  %v1533_v30 = vcombine.high %v1476_v18, %v1492_v3  ;;  %v1395_v61 = vrot.slane %v1381_v50, %v1904_v20  ;;  %v564_v8 = vcombine.high %v524_v57, %v556_v55 }
 0x102   : > { %v1548_v15 = vcombine.low %v1483_v19, %v1499_v6  ;;  %v1516_v1 = vcombine.low %v1451_v58, %v1467_v4  ;;  %v1549_v18 = vcombine.high %v1483_v19, %v1499_v6  ;;  %v646_v10 = vcombine.high %v2417_v49, %v2420_v51 }
 0x103   : > { %1654 = vrot.lane.b32.xlu1 %v1431_v48, %s1843_s24  ;;  %v1540_v31 = vrot.slane %v1532_v47, %v1904_v20  ;;  %v1547_v17 = vrot.slane %v1533_v30, %v1904_v20  ;;  %v1434_v35 = vcombine.low %v1395_v61, %v1427_v62  ;;  %v698_v47 = vcombine.high %v653_v34, %v685_v38 }
 0x104   : > { %v1556_v42 = vrot.slane %v1548_v15, %v1904_v20  ;;  %v1524_v46 = vrot.slane %v1516_v1, %v1904_v20  ;;  %v1517_v48 = vcombine.high %v1451_v58, %v1467_v4  ;;  %v678_v11 = vcombine.high %v2423_v52, %v628_v56  ;;  %v792_v52 = vpop.permute.xlu0 %791 }
 0x105   : > { %v1564_v43 = vcombine.low %v1508_v45, %v1540_v31  ;;  %v1565_v16 = vcombine.high %v1508_v45, %v1540_v31  ;;  %v1566_v36 = vcombine.low %v1515_v28, %v1547_v17  ;;  %v1567_v63 = vcombine.high %v1515_v28, %v1547_v17 }
 0x106   : > { %v1568_v3 = vcombine.low %v1524_v46, %v1556_v42  ;;  %v1435_v2 = vcombine.high %v1395_v61, %v1427_v62  ;;  %v1563_v25 = vrot.slane %v1549_v18, %v1904_v20  ;;  %v1531_v21 = vrot.slane %v1517_v48, %v1904_v20 }
 0x107   : > { %1662 = vrot.lane.b32.xlu1 %v1432_v32, %s1844_s25  ;;  %1632 = vrot.lane.b32.xlu0 %v1564_v43, %s1839_s20  ;;  %v660_v22 = vrot.slane %v646_v10, %v1904_v20  ;;  %v692_v45 = vrot.slane %v678_v11, %v1904_v20  ;;  %v1569_v23 = vcombine.high %v1524_v46, %v1556_v42 }
 0x108   : > { %v1571_v31 = vcombine.high %v1531_v21, %v1563_v25  ;;  %v1570_v32 = vcombine.low %v1531_v21, %v1563_v25  ;;  %v855_v29 = vsel %vm854_vm11, %v2251_v12, %v792_v52 }
 0x109   : > { %v699_v30 = vcombine.low %v660_v22, %v692_v45  ;;  %v700_v43 = vcombine.high %v660_v22, %v692_v45 }
 0x10b   : > { %799 = vrot.lane.b32.xlu1 %v562_v13, %s1845_s26  ;;  %1640 = vrot.lane.b32.xlu0 %v1565_v16, %s1840_s21 }
 0x10f   : > { %1670 = vrot.lane.b32.xlu1 %v1433_v60, %s1845_s26  ;;  %1648 = vrot.lane.b32.xlu0 %v1566_v36, %s1841_s22 }
 0x113   : > { %807 = vrot.lane.b32.xlu1 %v563_v0, %s1846_s27  ;;  %1656 = vrot.lane.b32.xlu0 %v1567_v63, %s1843_s24 }
 0x117   : > { %1678 = vrot.lane.b32.xlu1 %v1434_v35, %s1846_s27  ;;  %793 = vrot.lane.b32.xlu0 %v697_v7, %s1844_s25 }
 0x11b   : > { %815 = vrot.lane.b32.xlu1 %v564_v8, %s1842_s23  ;;  %1664 = vrot.lane.b32.xlu0 %v1568_v3, %s1844_s25 }
 0x11f   : > { %1686 = vrot.lane.b32.xlu1 %v1435_v2, %s1842_s23  ;;  %801 = vrot.lane.b32.xlu0 %v698_v47, %s1845_s26 }
 0x123   : > { %1688 = vrot.lane.b32.xlu1 %v1571_v31, %s1842_s23  ;;  %1672 = vrot.lane.b32.xlu0 %v1569_v23, %s1845_s26 }
 0x127   : > { %809 = vrot.lane.b32.xlu0 %v699_v30, %s1846_s27 }
 0x12b   : > { %1680 = vrot.lane.b32.xlu0 %v1570_v32, %s1846_s27 }
 0x12f   : > { %817 = vrot.lane.b32.xlu0 %v700_v43, %s1842_s23 }
 0x149   : > { %v1575_v49 = vpop.permute.xlu1 %1574 }
 0x14a   : > { %v1692_v50 = vsel %vm821_vm0, %v1156_v24, %v1575_v49 }
 0x14d   : > { %v1583_v51 = vpop.permute.xlu1 %1582 }
 0x14e   : > { %v1694_v4 = vsel %vm824_vm1, %v1692_v50, %v1583_v51 }
 0x151   : > { %v1591_v20 = vpop.permute.xlu1 %1590 }
 0x152   : > { %v1696_v15 = vsel %vm827_vm2, %v1694_v4, %v1591_v20 }
 0x155   : > { %v1599_v56 = vpop.permute.xlu1 %1598 }
 0x156   : > { %v1698_v63 = vsel %vm830_vm3, %v1696_v15, %v1599_v56 }
 0x159   : > { %v1607_v53 = vpop.permute.xlu1 %1606  ;;  %v1577_v13 = vpop.permute.xlu0 %1576 }
 0x15a   : > { %v1700_v62 = vsel %vm833_vm4, %v1698_v63, %v1607_v53  ;;  %v1693_v11 = vsel %vm821_vm0, %v1292_v9, %v1577_v13  ;;  %v853_v13 = vsel %vm851_vm10, %v2247_v39, %v2482_v44 }
 0x15d   : > { %v1585_v14 = vpop.permute.xlu0 %1584  ;;  %v1615_v16 = vpop.permute.xlu1 %1614 }
 0x15e   : > { %v1702_v1 = vsel %vm836_vm5, %v1700_v62, %v1615_v16  ;;  %v1695_v22 = vsel %vm824_vm1, %v1693_v11, %v1585_v14 }
 0x161   : > { %v1593_v17 = vpop.permute.xlu0 %1592  ;;  %v1623_v57 = vpop.permute.xlu1 %1622 }
 0x162   : > { %v1704_v37 = vsel %vm839_vm6, %v1702_v1, %v1623_v57  ;;  %v1697_v31 = vsel %vm827_vm2, %v1695_v22, %v1593_v17 }
 0x165   : > { %v1601_v55 = vpop.permute.xlu0 %1600 }
 0x166   : > { %v1699_v23 = vsel %vm830_vm3, %v1697_v31, %v1601_v55 }
 0x169   : > { %v1631_v54 = vpop.permute.xlu1 %1630  ;;  %v1609_v33 = vpop.permute.xlu0 %1608 }
 0x16a   : > { %v1706_v24 = vsel %vm842_vm7, %v1704_v37, %v1631_v54  ;;  %v1701_v30 = vsel %vm833_vm4, %v1699_v23, %v1609_v33 }
 0x16d   : > { %v1639_v26 = vpop.permute.xlu1 %1638  ;;  %v1617_v27 = vpop.permute.xlu0 %1616 }
 0x16e   : > { %v1708_v35 = vsel %vm845_vm8, %v1706_v24, %v1639_v26  ;;  %v1703_v41 = vsel %vm836_vm5, %v1701_v30, %v1617_v27 }
 0x171   : > { %v1647_v28 = vpop.permute.xlu1 %1646  ;;  %v1625_v59 = vpop.permute.xlu0 %1624 }
 0x172   : > { %v1710_v8 = vsel %vm848_vm9, %v1708_v35, %v1647_v28  ;;  %v1705_v40 = vsel %vm839_vm6, %v1703_v41, %v1625_v59 }
 0x175   : > { %v1655_v5 = vpop.permute.xlu1 %1654 }
 0x176   : > { %v1712_v3 = vsel %vm851_vm10, %v1710_v8, %v1655_v5 }
 0x179   : > { %v1663_v6 = vpop.permute.xlu1 %1662  ;;  %v1633_v60 = vpop.permute.xlu0 %1632 }
 0x17a   : > { %v1714_v48 = vsel %vm854_vm11, %v1712_v3, %v1663_v6  ;;  %v1707_v9 = vsel %vm842_vm7, %v1705_v40, %v1633_v60 }
 0x17d   : > { %v800_v36 = vpop.permute.xlu1 %799  ;;  %v1641_v0 = vpop.permute.xlu0 %1640 }
 0x17e   : > { %v858_v42 = vsel %vm857_vm12, %v855_v29, %v800_v36  ;;  %v1709_v43 = vsel %vm845_vm8, %v1707_v9, %v1641_v0 }
 0x181   : > { %v1671_v34 = vpop.permute.xlu1 %1670  ;;  %v1649_v38 = vpop.permute.xlu0 %1648 }
 0x182   : > { %v1716_v10 = vsel %vm857_vm12, %v1714_v48, %v1671_v34  ;;  %v1711_v51 = vsel %vm848_vm9, %v1709_v43, %v1649_v38 }
 0x185   : > { %v808_v19 = vpop.permute.xlu1 %807  ;;  %v1657_v58 = vpop.permute.xlu0 %1656 }
 0x186   : > { %v861_v46 = vsel %vm860_vm13, %v858_v42, %v808_v19  ;;  %v1713_v20 = vsel %vm851_vm10, %v1711_v51, %v1657_v58 }
 0x189   : > { %v1679_v61 = vpop.permute.xlu1 %1678  ;;  %v794_v7 = vpop.permute.xlu0 %793 }
 0x18a   : > { %v1718_v2 = vsel %vm860_vm13, %v1716_v10, %v1679_v61  ;;  %v856_v17 = vsel %vm854_vm11, %v853_v13, %v794_v7 }
 0x18d   : > { %v816_v18 = vpop.permute.xlu1 %815  ;;  %v1665_v12 = vpop.permute.xlu0 %1664 }
 0x18e   : > { %v864_v47 = vsel %vm863_vm14, %v861_v46, %v816_v18  ;;  %v1715_v52 = vsel %vm854_vm11, %v1713_v20, %v1665_v12 }
 0x18f   : > { %866 = vst [vmem:[%s2504_s3] sm:$0xff] %v864_v47 }
 0x191   : > { %v1687_v25 = vpop.permute.xlu1 %1686  ;;  %v802_v21 = vpop.permute.xlu0 %801 }
 0x192   : > { %v1720_v45 = vsel %vm863_vm14, %v1718_v2, %v1687_v25  ;;  %v859_v55 = vsel %vm857_vm12, %v856_v17, %v802_v21 }
 0x193   : > { %1722 = vst [vmem:[%s2504_s3 + $0x8] sm:$0xff] %v1720_v45 }
 0x195   : > { %v1673_v32 = vpop.permute.xlu0 %1672  ;;  %v1689_v14 = vpop.permute.xlu1 %1688 }
 0x196   : > { %v1717_v56 = vsel %vm857_vm12, %v1715_v52, %v1673_v32 }
 0x199   : > { %v810_v49 = vpop.permute.xlu0 %809 }
 0x19a   : > { %v862_v54 = vsel %vm860_vm13, %v859_v55, %v810_v49 }
 0x19d   : > { %v1681_v53 = vpop.permute.xlu0 %1680 }
 0x19e   : > { %v1719_v16 = vsel %vm860_vm13, %v1717_v56, %v1681_v53 }
 0x19f   : > { %v1721_v57 = vsel %vm863_vm14, %v1719_v16, %v1689_v14 }
 0x1a0   : > { %1723 = vst [vmem:[%s2504_s3 + $0x18] sm:$0xff] %v1721_v57 }
 0x1a1   : > { %v818_v33 = vpop.permute.xlu0 %817 }
 0x1a2   : > { %v865_v26 = vsel %vm863_vm14, %v862_v54, %v818_v33 }
 0x1a3   : > { %867 = vst [vmem:[%s2504_s3 + $0x10] sm:$0xff] %v865_v26 }
 0x1a4 PF: > { %s11_s6 = sadd.s32 1, %s1828_s6  }
 0x1a5   : > { %p8_p5 = scmp.ge.s32.totalorder %s11_s6, 4  }
 0x1a7   :  { %10 = sbr.rel (!%p8_p5) target bundleno = 1 (0x1), region = 54 }

</bundles_post_ra>
